<compile_context>
chip_gen: v6e
topology: v6e:2x2x1
jax: 0.10.0
libtpu: 0.0.40
codegen_flags: <defaults>
</compile_context>

<pallas_src>
import jax
import jax.numpy as jnp
from jax.experimental import pallas as pl
from jax.experimental.pallas import tpu as pltpu


def _grid_layer_kernel(x_ref, w_ref, b_ref, o_ref):
    """One (batch-tile, layer) grid step.

    x_ref, o_ref: (H_pad, LANES) packed activations for one batch tile.
    w_ref, b_ref: (H_pad, LANES) one layer's weight / bias grid (zero in padding).
    o_ref doubles as the running activation (resident across the layer axis).
    """
    l = pl.program_id(1)
    h_pad, lanes = o_ref.shape

    @pl.when(l == 0)
    def _():
        o_ref[...] = x_ref[...]

    # elementwise weight * activation; zero on every padding row / padding lane
    # because the weight grid is zero there.
    y = o_ref[...] * w_ref[...]

    # 3x3 zero-padded box sum, separable, via XLU rolls.  pltpu.roll follows the
    # jnp.roll convention: roll(y, 1, ax)[i] == y[i-1]; roll(y, n-1, ax)[i] == y[i+1].
    # Every wrap-around lands on a zeroed padding row / padding column, so no
    # boundary masks are needed and nothing leaks across packed batch segments.
    s = pltpu.roll(y, 1, 0) + y + pltpu.roll(y, h_pad - 1, 0)
    s = pltpu.roll(s, 1, 1) + s + pltpu.roll(s, lanes - 1, 1)

    o_ref[...] = jnp.sin(s + b_ref[...])


def _round_up(x, m):
    return (x + m - 1) // m * m


def _packing_params(H, W):
    """Pick padded sizes so lanes are 128-dense and roll padding exists."""
    h_pad = _round_up(H + 1, 8)                # >= H+1 zero rows, sublane aligned
    w_seg = W + 1                              # >= W+1: one zero column per image
    if w_seg <= 128:
        w_seg = 1 << (w_seg - 1).bit_length()  # pow2 so segments tile a 128-lane vreg
        seg = 128 // w_seg
        lanes = 128
    else:
        w_seg = _round_up(w_seg, 128)
        seg = 1
        lanes = w_seg
    return h_pad, w_seg, seg, lanes


@jax.jit
def neural_grid_forward(x_nchw, weights, biases):
    """x_nchw: (B, 1, H, W); weights/biases: (L, H, W). Returns (B, 1, H, W) f32."""
    B, C, H, W = x_nchw.shape
    L = weights.shape[0]
    assert C == 1, "GridLayer operates on a single channel"

    h_pad, w_seg, seg, lanes = _packing_params(H, W)
    nt = -(-B // seg)                    # number of lane-packed batch tiles
    b_pad = nt * seg
    f32 = jnp.float32

    # ---- pack activations: (B, H, W) -> (NT, H_pad, SEG*W_seg), lane = s*W_seg + w
    x = x_nchw[:, 0].astype(f32)
    x = jnp.pad(x, ((0, b_pad - B), (0, h_pad - H), (0, w_seg - W)))
    x = x.reshape(nt, seg, h_pad, w_seg).transpose(0, 2, 1, 3).reshape(nt, h_pad, lanes)

    # ---- zero-padded weight/bias grids (this zero padding IS the 3x3 zero pad),
    # lane-broadcast by the constant SEG only (no batch-size scaling; SEG==1 if W>=128).
    wp = jnp.pad(weights.astype(f32), ((0, 0), (0, h_pad - H), (0, w_seg - W)))
    bp = jnp.pad(biases.astype(f32), ((0, 0), (0, h_pad - H), (0, w_seg - W)))
    if seg > 1:
        wp = jnp.tile(wp, (1, 1, seg))
        bp = jnp.tile(bp, (1, 1, seg))

    tile_bytes = h_pad * lanes * 4
    elems = nt * h_pad * lanes

    grid_spec = pltpu.PrefetchScalarGridSpec(
        num_scalar_prefetch=0,
        grid=(nt, L),
        in_specs=[
            pl.BlockSpec((None, h_pad, lanes), lambda b, l: (b, 0, 0)),  # activations
            pl.BlockSpec((None, h_pad, lanes), lambda b, l: (l, 0, 0)),  # layer weight
            pl.BlockSpec((None, h_pad, lanes), lambda b, l: (l, 0, 0)),  # layer bias
        ],
        out_specs=pl.BlockSpec((None, h_pad, lanes), lambda b, l: (b, 0, 0)),
    )

    out_packed = pl.pallas_call(
        _grid_layer_kernel,
        out_shape=jax.ShapeDtypeStruct((nt, h_pad, lanes), f32),
        grid_spec=grid_spec,
        input_output_aliases={0: 0},     # reuse the packed activation buffer as output
        compiler_params=pltpu.CompilerParams(
            dimension_semantics=("parallel", "arbitrary"),
            vmem_limit_bytes=min(32 * 1024 * 1024, max(4 * 1024 * 1024, 16 * tile_bytes)),
        ),
        cost_estimate=pl.CostEstimate(
            flops=6 * L * elems,
            transcendentals=L * elems,
            bytes_accessed=4 * (2 * elems + 2 * nt * L * h_pad * lanes),
        ),
    )(x, wp, bp)

    # ---- unpack: (NT, H_pad, SEG*W_seg) -> (B, 1, H, W)
    out = out_packed.reshape(nt, h_pad, seg, w_seg).transpose(0, 2, 1, 3)
    out = out.reshape(b_pad, h_pad, w_seg)[:B, :H, :W]
    return out[:, None, :, :]


def neural_grid_reference(x_nchw, weights, biases):
    """Pure-JAX reference mirroring the PyTorch unfold formulation."""
    x = x_nchw[:, 0].astype(jnp.float32)
    H, W = x.shape[1], x.shape[2]
    for l in range(weights.shape[0]):
        y = x * weights[l][None]
        yp = jnp.pad(y, ((0, 0), (1, 1), (1, 1)))
        s = jnp.zeros_like(y)
        for dy in range(3):
            for dx in range(3):
                s = s + yp[:, dy:dy + H, dx:dx + W]
        x = jnp.sin(s + biases[l][None])
    return x[:, None]


if __name__ == "__main__":
    key = jax.random.PRNGKey(0)
    B, H, W, L = 2, 16, 16, 3          # batch, grid_height, grid_width, n_layers
    kx, kw, kb = jax.random.split(key, 3)

    # Input image batch, NCHW with a single channel (as the module expects).
    x = jax.random.normal(kx, (B, 1, H, W), dtype=jnp.float32)

    # Xavier-uniform weight grids (fan_in = fan_out = 3*3 = 9, as in GridLayer).
    fan_in = fan_out = 9
    bound = (6.0 / (fan_in + fan_out)) ** 0.5
    weights = jax.random.uniform(kw, (L, H, W), jnp.float32, -bound, bound)
    # Module initializes biases to zero; use small random values here so the
    # bias-add path is actually exercised by the correctness check.
    biases = 0.1 * jax.random.normal(kb, (L, H, W), dtype=jnp.float32)

    out = jax.block_until_ready(neural_grid_forward(x, weights, biases))
    ref = neural_grid_reference(x, weights, biases)

    assert out.shape == (B, 1, H, W), out.shape
    err = float(jnp.max(jnp.abs(out - ref)))
    assert jnp.allclose(out, ref, atol=1e-5, rtol=1e-5), err
    print("KERNEL_OK")
</pallas_src>

<mosaic_0001>
module attributes {stable_mosaic.version = 11 : i64} {
  func.func @_grid_layer_kernel(%arg0: i32, %arg1: i32, %arg2: memref<1x24x128xf32, #tpu.memory_space<vmem>>, %arg3: memref<1x24x128xf32, #tpu.memory_space<vmem>>, %arg4: memref<1x24x128xf32, #tpu.memory_space<vmem>>, %arg5: memref<1x24x128xf32, #tpu.memory_space<vmem>>) attributes {dimension_semantics = [#tpu.dimension_semantics<parallel>, #tpu.dimension_semantics<arbitrary>], iteration_bounds = array<i64: 1, 3>, scalar_prefetch = 0 : i64, scratch_operands = 0 : i64, tpu.core_type = #tpu.core_type<tc>, window_params = [{transform_indices = @transform_0, window_bounds = array<i64: 1, 24, 128>}, {transform_indices = @transform_1, window_bounds = array<i64: 1, 24, 128>}, {transform_indices = @transform_2, window_bounds = array<i64: 1, 24, 128>}, {transform_indices = @transform_3, window_bounds = array<i64: 1, 24, 128>}]} {
    %c0_i32 = arith.constant 0 : i32
    %0 = arith.cmpi eq, %arg1, %c0_i32 : i32
    %1 = arith.extui %0 : i1 to i32
    %c0_i32_0 = arith.constant 0 : i32
    %2 = arith.cmpi ne, %1, %c0_i32_0 : i32
    scf.if %2 {
      %c0_13 = arith.constant 0 : index
      %c0_14 = arith.constant 0 : index
      %c0_15 = arith.constant 0 : index
      %23 = vector.load %arg2[%c0_13, %c0_14, %c0_15] : memref<1x24x128xf32, #tpu.memory_space<vmem>>, vector<1x24x128xf32>
      %24 = vector.shape_cast %23 : vector<1x24x128xf32> to vector<24x128xf32>
      %c0_16 = arith.constant 0 : index
      %c0_17 = arith.constant 0 : index
      %c0_18 = arith.constant 0 : index
      %25 = vector.load %arg5[%c0_16, %c0_17, %c0_18] : memref<1x24x128xf32, #tpu.memory_space<vmem>>, vector<1x24x128xf32>
      %26 = vector.shape_cast %25 : vector<1x24x128xf32> to vector<24x128xf32>
      %27 = vector.shape_cast %24 : vector<24x128xf32> to vector<1x24x128xf32>
      tpu.vector_store %arg5[%c0_16, %c0_17, %c0_18], %27 {strides = array<i32>} : memref<1x24x128xf32, #tpu.memory_space<vmem>>, vector<1x24x128xf32>,
    } else {
    }
    %c0 = arith.constant 0 : index
    %c0_1 = arith.constant 0 : index
    %c0_2 = arith.constant 0 : index
    %3 = vector.load %arg5[%c0, %c0_1, %c0_2] : memref<1x24x128xf32, #tpu.memory_space<vmem>>, vector<1x24x128xf32>
    %4 = vector.shape_cast %3 : vector<1x24x128xf32> to vector<24x128xf32>
    %c0_3 = arith.constant 0 : index
    %c0_4 = arith.constant 0 : index
    %c0_5 = arith.constant 0 : index
    %5 = vector.load %arg3[%c0_3, %c0_4, %c0_5] : memref<1x24x128xf32, #tpu.memory_space<vmem>>, vector<1x24x128xf32>
    %6 = vector.shape_cast %5 : vector<1x24x128xf32> to vector<24x128xf32>
    %7 = arith.mulf %4, %6 : vector<24x128xf32>
    %c1_i32 = arith.constant 1 : i32
    %8 = tpu.dynamic_rotate %7 by %c1_i32 dim 0 : vector<24x128xf32>, i32 -> vector<24x128xf32>
    %9 = arith.addf %8, %7 : vector<24x128xf32>
    %c23_i32 = arith.constant 23 : i32
    %10 = tpu.dynamic_rotate %7 by %c23_i32 dim 0 : vector<24x128xf32>, i32 -> vector<24x128xf32>
    %11 = arith.addf %9, %10 : vector<24x128xf32>
    %c1_i32_6 = arith.constant 1 : i32
    %12 = tpu.dynamic_rotate %11 by %c1_i32_6 dim 1 : vector<24x128xf32>, i32 -> vector<24x128xf32>
    %13 = arith.addf %12, %11 : vector<24x128xf32>
    %c127_i32 = arith.constant 127 : i32
    %14 = tpu.dynamic_rotate %11 by %c127_i32 dim 1 : vector<24x128xf32>, i32 -> vector<24x128xf32>
    %15 = arith.addf %13, %14 : vector<24x128xf32>
    %c0_7 = arith.constant 0 : index
    %c0_8 = arith.constant 0 : index
    %c0_9 = arith.constant 0 : index
    %16 = vector.load %arg4[%c0_7, %c0_8, %c0_9] : memref<1x24x128xf32, #tpu.memory_space<vmem>>, vector<1x24x128xf32>
    %17 = vector.shape_cast %16 : vector<1x24x128xf32> to vector<24x128xf32>
    %18 = arith.addf %15, %17 : vector<24x128xf32>
    %19 = math.sin %18 : vector<24x128xf32>
    %c0_10 = arith.constant 0 : index
    %c0_11 = arith.constant 0 : index
    %c0_12 = arith.constant 0 : index
    %20 = vector.load %arg5[%c0_10, %c0_11, %c0_12] : memref<1x24x128xf32, #tpu.memory_space<vmem>>, vector<1x24x128xf32>
    %21 = vector.shape_cast %20 : vector<1x24x128xf32> to vector<24x128xf32>
    %22 = vector.shape_cast %19 : vector<24x128xf32> to vector<1x24x128xf32>
    tpu.vector_store %arg5[%c0_10, %c0_11, %c0_12], %22 {strides = array<i32>} : memref<1x24x128xf32, #tpu.memory_space<vmem>>, vector<1x24x128xf32>,
    return
  }
  func.func @transform_0(%arg0: i32, %arg1: i32) -> (i32, i32, i32) {
    %c0_i32 = arith.constant 0 : i32
    %c0_i32_0 = arith.constant 0 : i32
    %c0_i32_1 = arith.constant 0 : i32
    return %arg0, %c0_i32, %c0_i32_0 : i32, i32, i32
  }
  func.func @transform_1(%arg0: i32, %arg1: i32) -> (i32, i32, i32) {
    %c0_i32 = arith.constant 0 : i32
    %c0_i32_0 = arith.constant 0 : i32
    %c0_i32_1 = arith.constant 0 : i32
    return %arg1, %c0_i32, %c0_i32_0 : i32, i32, i32
  }
  func.func @transform_2(%arg0: i32, %arg1: i32) -> (i32, i32, i32) {
    %c0_i32 = arith.constant 0 : i32
    %c0_i32_0 = arith.constant 0 : i32
    %c0_i32_1 = arith.constant 0 : i32
    return %arg1, %c0_i32, %c0_i32_0 : i32, i32, i32
  }
  func.func @transform_3(%arg0: i32, %arg1: i32) -> (i32, i32, i32) {
    %c0_i32 = arith.constant 0 : i32
    %c0_i32_0 = arith.constant 0 : i32
    %c0_i32_1 = arith.constant 0 : i32
    return %arg0, %c0_i32, %c0_i32_0 : i32, i32, i32
  }
}

</mosaic_0001>

<bundles_post_ra>
// kernel: tile.14
= control target key start
LH: loop header
LB: loop body
LE: loop exit
PB: predicated region body
PF: predicated region fallthrough
CT: control target
= control target key end

     0   :  { %vm363_vm0 = vcmask 1047556   ;;  %s909_s10 = smov 96   ;;  %vm365_vm1 = vcmask 261120   ;;  %s911_s12 = smov 32   ;;  %vm447_vm2 = vcmask 1048320   ;;  %vm545_vm3 = vcmask 785920   ;;  %s1345_s0 = inlined_call_operand.vmem [shape: f32[3,24,4,32], index: 0, kind: input, shape index: {}]   ;;  %s1346_s1 = inlined_call_operand.vmem [shape: f32[3,24,128], index: 1, kind: output, shape index: {}]  }
   0x1   :  { %v867_v0 = vld [vmem:[%s1345_s0 + $0x1c] sm:$0xf]  ;;  %v868_v1 = vld [vmem:[%s1345_s0 + $0x18] sm:$0xf]  ;;  %v869_v2 = vld [vmem:[%s1345_s0 + $0x14] sm:$0xf] }
   0x2   :  { %329 = vst [vmem:[#allocation0 + $0x38] sm:$0xf] %v867_v0  ;;  %334 = vst [vmem:[#allocation0 + $0x30] sm:$0xf] %v868_v1  ;;  %v870_v3 = vld [vmem:[%s1345_s0 + $0x10] sm:$0xf] }
   0x3   :  { %339 = vst [vmem:[#allocation0 + $0x28] sm:$0xf] %v869_v2  ;;  %v871_v4 = vld [vmem:[%s1345_s0 + $0xc] sm:$0xf]  ;;  %v872_v5 = vld [vmem:[%s1345_s0 + $0x8] sm:$0xf] }
   0x4   :  { %344 = vst [vmem:[#allocation0 + $0x20] sm:$0xf] %v870_v3  ;;  %349 = vst [vmem:[#allocation0 + $0x18] sm:$0xf] %v871_v4  ;;  %v873_v6 = vld [vmem:[%s1345_s0 + $0x4] sm:$0xf] }
   0x5   :  { %354 = vst [vmem:[#allocation0 + $0x10] sm:$0xf] %v872_v5  ;;  %v359_v7 = vld [vmem:[%s1345_s0] sm:$0xf]  ;;  %358 = vst [vmem:[#allocation0 + $0x8] sm:$0xf] %v873_v6 }
   0x6   :  { %360 = vst [vmem:[#allocation0] sm:$0xf] %v359_v7  ;;  %v835_v8 = vld [vmem:[%s1345_s0 + $0x9c] sm:$0xf]  ;;  %v836_v9 = vld [vmem:[%s1345_s0 + $0x98] sm:$0xf] }
   0x7   :  { %v837_v10 = vld [vmem:[%s1345_s0 + $0x94] sm:$0xf]  ;;  %169 = vst [vmem:[#allocation0 + $0x138] sm:$0xf] %v835_v8  ;;  %174 = vst [vmem:[#allocation0 + $0x130] sm:$0xf] %v836_v9 }
   0x8   :  { %179 = vst [vmem:[#allocation0 + $0x128] sm:$0xf] %v837_v10  ;;  %v838_v11 = vld [vmem:[%s1345_s0 + $0x90] sm:$0xf]  ;;  %v839_v12 = vld [vmem:[%s1345_s0 + $0x8c] sm:$0xf] }
   0x9   :  { %v840_v13 = vld [vmem:[%s1345_s0 + $0x88] sm:$0xf]  ;;  %184 = vst [vmem:[#allocation0 + $0x120] sm:$0xf] %v838_v11  ;;  %189 = vst [vmem:[#allocation0 + $0x118] sm:$0xf] %v839_v12 }
   0xa   :  { %194 = vst [vmem:[#allocation0 + $0x110] sm:$0xf] %v840_v13  ;;  %v841_v14 = vld [vmem:[%s1345_s0 + $0x84] sm:$0xf]  ;;  %v842_v15 = vld [vmem:[%s1345_s0 + $0x80] sm:$0xf] }
   0xb   :  { %v803_v16 = vld [vmem:[%s1345_s0 + $0x11c] sm:$0xf]  ;;  %199 = vst [vmem:[#allocation0 + $0x108] sm:$0xf] %v841_v14  ;;  %204 = vst [vmem:[#allocation0 + $0x100] sm:$0xf] %v842_v15 }
   0xc   :  { %9 = vst [vmem:[#allocation0 + $0x238] sm:$0xf] %v803_v16  ;;  %v804_v17 = vld [vmem:[%s1345_s0 + $0x118] sm:$0xf]  ;;  %v805_v18 = vld [vmem:[%s1345_s0 + $0x114] sm:$0xf] }
   0xd   :  { %v806_v19 = vld [vmem:[%s1345_s0 + $0x110] sm:$0xf]  ;;  %14 = vst [vmem:[#allocation0 + $0x230] sm:$0xf] %v804_v17  ;;  %19 = vst [vmem:[#allocation0 + $0x228] sm:$0xf] %v805_v18 }
   0xe   :  { %24 = vst [vmem:[#allocation0 + $0x220] sm:$0xf] %v806_v19  ;;  %v807_v20 = vld [vmem:[%s1345_s0 + $0x10c] sm:$0xf]  ;;  %v808_v21 = vld [vmem:[%s1345_s0 + $0x108] sm:$0xf] }
   0xf   :  { %v809_v22 = vld [vmem:[%s1345_s0 + $0x104] sm:$0xf]  ;;  %29 = vst [vmem:[#allocation0 + $0x218] sm:$0xf] %v807_v20  ;;  %34 = vst [vmem:[#allocation0 + $0x210] sm:$0xf] %v808_v21 }
  0x10   :  { %39 = vst [vmem:[#allocation0 + $0x208] sm:$0xf] %v809_v22  ;;  %v810_v23 = vld [vmem:[%s1345_s0 + $0x100] sm:$0xf]  ;;  %v827_v24 = vld [vmem:[%s1345_s0 + $0xbc] sm:$0xf] }
  0x11   :  { %v828_v25 = vld [vmem:[%s1345_s0 + $0xb8] sm:$0xf]  ;;  %44 = vst [vmem:[#allocation0 + $0x200] sm:$0xf] %v810_v23  ;;  %129 = vst [vmem:[#allocation0 + $0x178] sm:$0xf] %v827_v24 }
  0x12   :  { %v442_v26 = vld [vmem:[#allocation0 + $0x3] ss:$8 sm:$0xf0]   ;;  %134 = vst [vmem:[#allocation0 + $0x170] sm:$0xf] %v828_v25  ;;  %vm643_vm4 = vcmask 523520  }
  0x13   :  { %v829_v27 = vld [vmem:[%s1345_s0 + $0xb4] sm:$0xf]  ;;  %v440_v28 = vld [vmem:[#allocation0 + $0x3] ss:$8 sm:$0xf]  }
  0x14   :  { %139 = vst [vmem:[#allocation0 + $0x168] sm:$0xf] %v829_v27  ;;  %v830_v29 = vld [vmem:[%s1345_s0 + $0xb0] sm:$0xf]  ;;  %v444_v30 = vsel %vm363_vm0, %v442_v26, %v440_v28  ;;  %v831_v31 = vld [vmem:[%s1345_s0 + $0xac] sm:$0xf] }
  0x15   :  { %144 = vst [vmem:[#allocation0 + $0x160] sm:$0xf] %v830_v29  ;;  %v832_v32 = vld [vmem:[%s1345_s0 + $0xa8] sm:$0xf]  ;;  %v833_v33 = vld [vmem:[%s1345_s0 + $0xa4] sm:$0xf]  ;;  %445 = vrot.lane.b32.xlu0 %v444_v30, %s909_s10 }
  0x16   :  { %v452_v34 = vld [vmem:[#allocation0 + $0x103] ss:$8 sm:$0xf0]   ;;  %149 = vst [vmem:[#allocation0 + $0x158] sm:$0xf] %v831_v31 }
  0x17   :  { %154 = vst [vmem:[#allocation0 + $0x150] sm:$0xf] %v832_v32  ;;  %159 = vst [vmem:[#allocation0 + $0x148] sm:$0xf] %v833_v33  ;;  %v834_v35 = vld [vmem:[%s1345_s0 + $0xa0] sm:$0xf] }
  0x18   :  { %v450_v36 = vld [vmem:[#allocation0 + $0x103] ss:$8 sm:$0xf]   ;;  %164 = vst [vmem:[#allocation0 + $0x140] sm:$0xf] %v834_v35 }
  0x19   :  { %v859_v37 = vld [vmem:[%s1345_s0 + $0x3c] sm:$0xf]  ;;  %v454_v38 = vsel %vm363_vm0, %v452_v34, %v450_v36  ;;  %v463_v39 = vld [vmem:[#allocation0 + $0x203] ss:$8 sm:$0xf0]  }
  0x1a   :  { %289 = vst [vmem:[#allocation0 + $0x78] sm:$0xf] %v859_v37  ;;  %v860_v40 = vld [vmem:[%s1345_s0 + $0x38] sm:$0xf]  ;;  %v861_v41 = vld [vmem:[%s1345_s0 + $0x34] sm:$0xf]  ;;  %455 = vrot.lane.b32.xlu0 %v454_v38, %s909_s10 }
  0x1b   :  { %294 = vst [vmem:[#allocation0 + $0x70] sm:$0xf] %v860_v40  ;;  %v862_v42 = vld [vmem:[%s1345_s0 + $0x30] sm:$0xf]  ;;  %v863_v43 = vld [vmem:[%s1345_s0 + $0x2c] sm:$0xf] }
  0x1c   :  { %v461_v44 = vld [vmem:[#allocation0 + $0x203] ss:$8 sm:$0xf]   ;;  %299 = vst [vmem:[#allocation0 + $0x68] sm:$0xf] %v861_v41 }
  0x1d   :  { %304 = vst [vmem:[#allocation0 + $0x60] sm:$0xf] %v862_v42  ;;  %309 = vst [vmem:[#allocation0 + $0x58] sm:$0xf] %v863_v43  ;;  %v864_v45 = vld [vmem:[%s1345_s0 + $0x28] sm:$0xf]  ;;  %v465_v46 = vsel %vm363_vm0, %v463_v39, %v461_v44 }
  0x1e   :  { %314 = vst [vmem:[#allocation0 + $0x50] sm:$0xf] %v864_v45  ;;  %v865_v47 = vld [vmem:[%s1345_s0 + $0x24] sm:$0xf]  ;;  %v866_v48 = vld [vmem:[%s1345_s0 + $0x20] sm:$0xf]  ;;  %466 = vrot.lane.b32.xlu1 %v465_v46, %s909_s10 }
  0x1f   :  { %v819_v49 = vld [vmem:[%s1345_s0 + $0xdc] sm:$0xf]  ;;  %v485_v50 = vld [vmem:[#allocation0 + $0x143] ss:$8 sm:$0xf0]  }
  0x20   :  { %319 = vst [vmem:[#allocation0 + $0x48] sm:$0xf] %v865_v47  ;;  %324 = vst [vmem:[#allocation0 + $0x40] sm:$0xf] %v866_v48  ;;  %v820_v51 = vld [vmem:[%s1345_s0 + $0xd8] sm:$0xf] }
  0x21   :  { %89 = vst [vmem:[#allocation0 + $0x1b8] sm:$0xf] %v819_v49  ;;  %94 = vst [vmem:[#allocation0 + $0x1b0] sm:$0xf] %v820_v51  ;;  %v821_v52 = vld [vmem:[%s1345_s0 + $0xd4] sm:$0xf] }
  0x22   :  { %v822_v53 = vld [vmem:[%s1345_s0 + $0xd0] sm:$0xf]  ;;  %v823_v54 = vld [vmem:[%s1345_s0 + $0xcc] sm:$0xf]  ;;  %99 = vst [vmem:[#allocation0 + $0x1a8] sm:$0xf] %v821_v52 }
  0x23   :  { %v483_v55 = vld [vmem:[#allocation0 + $0x143] ss:$8 sm:$0xf]   ;;  %104 = vst [vmem:[#allocation0 + $0x1a0] sm:$0xf] %v822_v53 }
  0x24   :  { %109 = vst [vmem:[#allocation0 + $0x198] sm:$0xf] %v823_v54  ;;  %v824_v56 = vld [vmem:[%s1345_s0 + $0xc8] sm:$0xf]  ;;  %v487_v57 = vsel %vm363_vm0, %v485_v50, %v483_v55  ;;  %v825_v58 = vld [vmem:[%s1345_s0 + $0xc4] sm:$0xf] }
  0x25   :  { %114 = vst [vmem:[#allocation0 + $0x190] sm:$0xf] %v824_v56  ;;  %v826_v59 = vld [vmem:[%s1345_s0 + $0xc0] sm:$0xf]  ;;  %v851_v60 = vld [vmem:[%s1345_s0 + $0x5c] sm:$0xf]  ;;  %488 = vrot.lane.b32.xlu0 %v487_v57, %s909_s10 }
  0x26   :  { %119 = vst [vmem:[#allocation0 + $0x188] sm:$0xf] %v825_v58  ;;  %124 = vst [vmem:[#allocation0 + $0x180] sm:$0xf] %v826_v59  ;;  %v852_v61 = vld [vmem:[%s1345_s0 + $0x58] sm:$0xf] }
  0x27   :  { %249 = vst [vmem:[#allocation0 + $0xb8] sm:$0xf] %v851_v60  ;;  %v853_v62 = vld [vmem:[%s1345_s0 + $0x54] sm:$0xf]  ;;  %v854_v63 = vld [vmem:[%s1345_s0 + $0x50] sm:$0xf] }
  0x28   :  { %v474_v0 = vld [vmem:[#allocation0 + $0x43] ss:$8 sm:$0xf0]   ;;  %254 = vst [vmem:[#allocation0 + $0xb0] sm:$0xf] %v852_v61 }
  0x29   :  { %259 = vst [vmem:[#allocation0 + $0xa8] sm:$0xf] %v853_v62  ;;  %264 = vst [vmem:[#allocation0 + $0xa0] sm:$0xf] %v854_v63  ;;  %v855_v1 = vld [vmem:[%s1345_s0 + $0x4c] sm:$0xf] }
  0x2a   :  { %269 = vst [vmem:[#allocation0 + $0x98] sm:$0xf] %v855_v1  ;;  %v856_v2 = vld [vmem:[%s1345_s0 + $0x48] sm:$0xf]  ;;  %v857_v3 = vld [vmem:[%s1345_s0 + $0x44] sm:$0xf] }
  0x2b   :  { %v858_v4 = vld [vmem:[%s1345_s0 + $0x40] sm:$0xf]  ;;  %274 = vst [vmem:[#allocation0 + $0x90] sm:$0xf] %v856_v2  ;;  %279 = vst [vmem:[#allocation0 + $0x88] sm:$0xf] %v857_v3 }
  0x2c   :  { %v472_v5 = vld [vmem:[#allocation0 + $0x43] ss:$8 sm:$0xf]   ;;  %284 = vst [vmem:[#allocation0 + $0x80] sm:$0xf] %v858_v4 }
  0x2d   :  { %v811_v6 = vld [vmem:[%s1345_s0 + $0xfc] sm:$0xf]  ;;  %v476_v7 = vsel %vm363_vm0, %v474_v0, %v472_v5  ;;  %v812_v8 = vld [vmem:[%s1345_s0 + $0xf8] sm:$0xf]  ;;  %v813_v9 = vld [vmem:[%s1345_s0 + $0xf4] sm:$0xf] }
  0x2e   :  { %49 = vst [vmem:[#allocation0 + $0x1f8] sm:$0xf] %v811_v6  ;;  %v814_v10 = vld [vmem:[%s1345_s0 + $0xf0] sm:$0xf]  ;;  %477 = vrot.lane.b32.xlu1 %v476_v7, %s909_s10  ;;  %54 = vst [vmem:[#allocation0 + $0x1f0] sm:$0xf] %v812_v8 }
  0x2f   :  { %v507_v11 = vld [vmem:[#allocation0 + $0x183] ss:$8 sm:$0xf0]   ;;  %59 = vst [vmem:[#allocation0 + $0x1e8] sm:$0xf] %v813_v9 }
  0x30   :  { %64 = vst [vmem:[#allocation0 + $0x1e0] sm:$0xf] %v814_v10  ;;  %v815_v12 = vld [vmem:[%s1345_s0 + $0xec] sm:$0xf]  ;;  %v816_v13 = vld [vmem:[%s1345_s0 + $0xe8] sm:$0xf] }
  0x31   :  { %69 = vst [vmem:[#allocation0 + $0x1d8] sm:$0xf] %v815_v12  ;;  %v817_v14 = vld [vmem:[%s1345_s0 + $0xe4] sm:$0xf]  ;;  %v818_v15 = vld [vmem:[%s1345_s0 + $0xe0] sm:$0xf] }
  0x32   :  { %v505_v16 = vld [vmem:[#allocation0 + $0x183] ss:$8 sm:$0xf]   ;;  %74 = vst [vmem:[#allocation0 + $0x1d0] sm:$0xf] %v816_v13 }
  0x33   :  { %79 = vst [vmem:[#allocation0 + $0x1c8] sm:$0xf] %v817_v14  ;;  %84 = vst [vmem:[#allocation0 + $0x1c0] sm:$0xf] %v818_v15  ;;  %v843_v17 = vld [vmem:[%s1345_s0 + $0x7c] sm:$0xf]  ;;  %v509_v18 = vsel %vm363_vm0, %v507_v11, %v505_v16 }
  0x34   :  { %v496_v19 = vld [vmem:[#allocation0 + $0x83] ss:$8 sm:$0xf0]   ;;  %209 = vst [vmem:[#allocation0 + $0xf8] sm:$0xf] %v843_v17  ;;  %510 = vrot.lane.b32.xlu0 %v509_v18, %s909_s10 }
  0x35   :  { %v844_v20 = vld [vmem:[%s1345_s0 + $0x78] sm:$0xf]  ;;  %v845_v21 = vld [vmem:[%s1345_s0 + $0x74] sm:$0xf]  ;;  %v846_v22 = vld [vmem:[%s1345_s0 + $0x70] sm:$0xf] }
  0x36   :  { %214 = vst [vmem:[#allocation0 + $0xf0] sm:$0xf] %v844_v20  ;;  %v847_v23 = vld [vmem:[%s1345_s0 + $0x6c] sm:$0xf]  ;;  %219 = vst [vmem:[#allocation0 + $0xe8] sm:$0xf] %v845_v21 }
  0x37   :  { %v494_v24 = vld [vmem:[#allocation0 + $0x83] ss:$8 sm:$0xf]   ;;  %224 = vst [vmem:[#allocation0 + $0xe0] sm:$0xf] %v846_v22 }
  0x38   :  { %229 = vst [vmem:[#allocation0 + $0xd8] sm:$0xf] %v847_v23  ;;  %v848_v25 = vld [vmem:[%s1345_s0 + $0x68] sm:$0xf]  ;;  %v498_v26 = vsel %vm363_vm0, %v496_v19, %v494_v24  ;;  %v849_v27 = vld [vmem:[%s1345_s0 + $0x64] sm:$0xf] }
  0x39   :  { %234 = vst [vmem:[#allocation0 + $0xd0] sm:$0xf] %v848_v25  ;;  %v850_v28 = vld [vmem:[%s1345_s0 + $0x60] sm:$0xf]  ;;  %499 = vrot.lane.b32.xlu1 %v498_v26, %s909_s10  ;;  %239 = vst [vmem:[#allocation0 + $0xc8] sm:$0xf] %v849_v27 }
  0x3a   :  { %v529_v29 = vld [vmem:[#allocation0 + $0x1c3] ss:$8 sm:$0xf0]   ;;  %244 = vst [vmem:[#allocation0 + $0xc0] sm:$0xf] %v850_v28  ;;  %s910_s0 = smov 64  }
  0x3b   :  { %v548_v30 = vld [vmem:[#allocation0 + $0x102] ss:$8 sm:$0xf]   ;;  %v527_v31 = vld [vmem:[#allocation0 + $0x1c3] ss:$8 sm:$0xf]  }
  0x3c   :  { %v550_v32 = vld [vmem:[#allocation0 + $0x102] ss:$8 sm:$0xf0]   ;;  %v531_v33 = vsel %vm363_vm0, %v529_v29, %v527_v31  ;;  %v636_v56 = vld [vmem:[#allocation0 + $0x1] ss:$8 sm:$0xf]  }
  0x3d   :  { %532 = vrot.lane.b32.xlu0 %v531_v33, %s909_s10  ;;  %v552_v35 = vsel %vm363_vm0, %v550_v32, %v548_v30  ;;  %v538_v36 = vld [vmem:[#allocation0 + $0x2] ss:$8 sm:$0xf]   ;;  %v638_v57 = vld [vmem:[#allocation0 + $0x1] ss:$8 sm:$0xf0]  }
  0x3e   :  { %v518_v34 = vld [vmem:[#allocation0 + $0xc3] ss:$8 sm:$0xf0]   ;;  %v570_v37 = vld [vmem:[#allocation0 + $0x42] ss:$8 sm:$0xf]   ;;  %v640_v0 = vsel %vm363_vm0, %v638_v57, %v636_v56 }
  0x3f   :  { %v572_v38 = vld [vmem:[#allocation0 + $0x42] ss:$8 sm:$0xf0]   ;;  %v657_v60 = vld [vmem:[#allocation0 + $0x201] ss:$8 sm:$0xf]  }
  0x40   :  { %v540_v40 = vld [vmem:[#allocation0 + $0x2] ss:$8 sm:$0xf0]   ;;  %v574_v42 = vsel %vm363_vm0, %v572_v38, %v570_v37  ;;  %v659_v61 = vld [vmem:[#allocation0 + $0x201] ss:$8 sm:$0xf0]  }
  0x41   :  { %v516_v39 = vld [vmem:[#allocation0 + $0xc3] ss:$8 sm:$0xf]   ;;  %553 = vrot.lane.b32.xlu0 %v552_v35, %s910_s0  ;;  %v542_v43 = vsel %vm363_vm0, %v540_v40, %v538_v36  ;;  %v592_v44 = vld [vmem:[#allocation0 + $0x82] ss:$8 sm:$0xf]   ;;  %v661_v18 = vsel %vm363_vm0, %v659_v61, %v657_v60 }
  0x42   :  { %v520_v41 = vsel %vm363_vm0, %v518_v34, %v516_v39  ;;  %v594_v45 = vld [vmem:[#allocation0 + $0x82] ss:$8 sm:$0xf0]   ;;  %v361_v62 = vld [vmem:[#allocation0] ss:$8 sm:$0xf]  }
  0x43   :  { %521 = vrot.lane.b32.xlu1 %v520_v41, %s909_s10  ;;  %v559_v46 = vld [vmem:[#allocation0 + $0x202] ss:$8 sm:$0xf]   ;;  %v596_v48 = vsel %vm363_vm0, %v594_v45, %v592_v44  ;;  %v362_v63 = vld [vmem:[#allocation0] ss:$8 sm:$0xf0]  }
  0x44   :  { %v561_v47 = vld [vmem:[#allocation0 + $0x202] ss:$8 sm:$0xf0]   ;;  %v364_v3 = vsel %vm363_vm0, %v362_v63, %v361_v62  ;;  %v395_v4 = vld [vmem:[#allocation0 + $0x100] ss:$8 sm:$0xf]  }
  0x45   :  { %575 = vrot.lane.b32.xlu0 %v574_v42, %s910_s0  ;;  %v563_v49 = vsel %vm363_vm0, %v561_v47, %v559_v46  ;;  %v614_v50 = vld [vmem:[#allocation0 + $0xc2] ss:$8 sm:$0xf]   ;;  %v397_v5 = vld [vmem:[#allocation0 + $0x100] ss:$8 sm:$0xf0]  }
  0x46   :  { %v616_v51 = vld [vmem:[#allocation0 + $0xc2] ss:$8 sm:$0xf0]   ;;  %366 = vst.msk [vmem:[%s1346_s1] sm:$0xff] %vm365_vm1, %v364_v3   ;;  %v399_v7 = vsel %vm363_vm0, %v397_v5, %v395_v4 }
  0x47   :  { %543 = vrot.lane.b32.xlu1 %v542_v43, %s910_s0  ;;  %v581_v52 = vld [vmem:[#allocation0 + $0x142] ss:$8 sm:$0xf]   ;;  %v618_v54 = vsel %vm363_vm0, %v616_v51, %v614_v50  ;;  %v431_v8 = vld [vmem:[#allocation0 + $0x200] ss:$8 sm:$0xf]  }
  0x48   :  { %v583_v53 = vld [vmem:[#allocation0 + $0x142] ss:$8 sm:$0xf0]   ;;  %v433_v9 = vld [vmem:[#allocation0 + $0x200] ss:$8 sm:$0xf0]  }
  0x49   :  { %597 = vrot.lane.b32.xlu0 %v596_v48, %s910_s0  ;;  %v585_v55 = vsel %vm363_vm0, %v583_v53, %v581_v52  ;;  %v603_v58 = vld [vmem:[#allocation0 + $0x182] ss:$8 sm:$0xf]   ;;  %877 = vst.msk [vmem:[%s1346_s1 + $0x20] sm:$0xff] %vm365_vm1, %v399_v7   ;;  %v435_v10 = vsel %vm363_vm0, %v433_v9, %v431_v8 }
  0x4a   :  { %v605_v59 = vld [vmem:[#allocation0 + $0x182] ss:$8 sm:$0xf0]   ;;  %v404_v11 = vld [vmem:[#allocation0 + $0x140] ss:$8 sm:$0xf]  }
  0x4b   :  { %564 = vrot.lane.b32.xlu1 %v563_v49, %s910_s0  ;;  %v625_v1 = vld [vmem:[#allocation0 + $0x1c2] ss:$8 sm:$0xf]   ;;  %v607_v6 = vsel %vm363_vm0, %v605_v59, %v603_v58  ;;  %v406_v12 = vld [vmem:[#allocation0 + $0x140] ss:$8 sm:$0xf0]  }
  0x4c   :  { %v627_v2 = vld [vmem:[#allocation0 + $0x1c2] ss:$8 sm:$0xf0]   ;;  %v679_v13 = vld [vmem:[#allocation0 + $0x141] ss:$8 sm:$0xf]   ;;  %v408_v15 = vsel %vm363_vm0, %v406_v12, %v404_v11 }
  0x4d   :  { %619 = vrot.lane.b32.xlu0 %v618_v54, %s910_s0  ;;  %v681_v14 = vld [vmem:[#allocation0 + $0x141] ss:$8 sm:$0xf0]   ;;  %881 = vst.msk [vmem:[%s1346_s1 + $0x40] sm:$0xff] %vm365_vm1, %v435_v10   ;;  %878 = vst.msk [vmem:[%s1346_s1 + $0x28] sm:$0xff] %vm365_vm1, %v408_v15   ;;  %v629_v24 = vsel %vm363_vm0, %v627_v2, %v625_v1 }
  0x4e   :  { %v368_v16 = vld [vmem:[#allocation0 + $0x40] ss:$8 sm:$0xf]   ;;  %v646_v19 = vld [vmem:[#allocation0 + $0x101] ss:$8 sm:$0xf]   ;;  %v683_v34 = vsel %vm363_vm0, %v681_v14, %v679_v13 }
  0x4f   :  { %586 = vrot.lane.b32.xlu1 %v585_v55, %s910_s0  ;;  %v370_v17 = vld [vmem:[#allocation0 + $0x40] ss:$8 sm:$0xf0]   ;;  %v648_v20 = vld [vmem:[#allocation0 + $0x101] ss:$8 sm:$0xf0]  }
  0x50   :  { %v372_v21 = vsel %vm363_vm0, %v370_v17, %v368_v16  ;;  %v413_v22 = vld [vmem:[#allocation0 + $0x180] ss:$8 sm:$0xf]   ;;  %v650_v36 = vsel %vm363_vm0, %v648_v20, %v646_v19  ;;  %v701_v37 = vld [vmem:[#allocation0 + $0x181] ss:$8 sm:$0xf]  }
  0x51   :  { %641 = vrot.lane.b32.xlu0 %v640_v0, %s911_s12  ;;  %v415_v23 = vld [vmem:[#allocation0 + $0x180] ss:$8 sm:$0xf0]   ;;  %874 = vst.msk [vmem:[%s1346_s1 + $0x8] sm:$0xff] %vm365_vm1, %v372_v21  }
  0x52   :  { %v417_v25 = vsel %vm363_vm0, %v415_v23, %v413_v22  ;;  %v377_v26 = vld [vmem:[#allocation0 + $0x80] ss:$8 sm:$0xf]   ;;  %v703_v38 = vld [vmem:[#allocation0 + $0x181] ss:$8 sm:$0xf0]  }
  0x53   :  { %608 = vrot.lane.b32.xlu1 %v607_v6, %s910_s0  ;;  %v379_v27 = vld [vmem:[#allocation0 + $0x80] ss:$8 sm:$0xf0]   ;;  %879 = vst.msk [vmem:[%s1346_s1 + $0x30] sm:$0xff] %vm365_vm1, %v417_v25   ;;  %v705_v41 = vsel %vm363_vm0, %v703_v38, %v701_v37 }
  0x54   :  { %v381_v28 = vsel %vm363_vm0, %v379_v27, %v377_v26  ;;  %v422_v29 = vld [vmem:[#allocation0 + $0x1c0] ss:$8 sm:$0xf]   ;;  %v668_v39 = vld [vmem:[#allocation0 + $0x41] ss:$8 sm:$0xf]  }
  0x55   :  { %v424_v30 = vld [vmem:[#allocation0 + $0x1c0] ss:$8 sm:$0xf0]   ;;  %662 = vrot.lane.b32.xlu0 %v661_v18, %s911_s12  ;;  %875 = vst.msk [vmem:[%s1346_s1 + $0x10] sm:$0xff] %vm365_vm1, %v381_v28  }
  0x56   :  { %v426_v31 = vsel %vm363_vm0, %v424_v30, %v422_v29  ;;  %v386_v32 = vld [vmem:[#allocation0 + $0xc0] ss:$8 sm:$0xf]   ;;  %v670_v40 = vld [vmem:[#allocation0 + $0x41] ss:$8 sm:$0xf0]  }
  0x57   :  { %v388_v33 = vld [vmem:[#allocation0 + $0xc0] ss:$8 sm:$0xf0]   ;;  %630 = vrot.lane.b32.xlu1 %v629_v24, %s910_s0  ;;  %880 = vst.msk [vmem:[%s1346_s1 + $0x38] sm:$0xff] %vm365_vm1, %v426_v31   ;;  %v672_v42 = vsel %vm363_vm0, %v670_v40, %v668_v39 }
  0x58   :  { %v390_v35 = vsel %vm363_vm0, %v388_v33, %v386_v32  ;;  %v723_v43 = vld [vmem:[#allocation0 + $0x1c1] ss:$8 sm:$0xf]  }
  0x59   :  { %876 = vst.msk [vmem:[%s1346_s1 + $0x18] sm:$0xff] %vm365_vm1, %v390_v35   ;;  %684 = vrot.lane.b32.xlu0 %v683_v34, %s911_s12  ;;  %v725_v44 = vld [vmem:[#allocation0 + $0x1c1] ss:$8 sm:$0xf0]  }
  0x5a   :  { %v690_v45 = vld [vmem:[#allocation0 + $0x81] ss:$8 sm:$0xf]   ;;  %v727_v47 = vsel %vm363_vm0, %v725_v44, %v723_v43 }
  0x5b   :  { %651 = vrot.lane.b32.xlu1 %v650_v36, %s911_s12  ;;  %v692_v46 = vld [vmem:[#allocation0 + $0x81] ss:$8 sm:$0xf0]  }
  0x5c   :  { %v694_v48 = vsel %vm363_vm0, %v692_v46, %v690_v45  ;;  %v712_v49 = vld [vmem:[#allocation0 + $0xc1] ss:$8 sm:$0xf]  }
  0x5d   :  { %706 = vrot.lane.b32.xlu0 %v705_v41, %s911_s12  ;;  %v714_v50 = vld [vmem:[#allocation0 + $0xc1] ss:$8 sm:$0xf0]  }
  0x5e   :  { %v716_v51 = vsel %vm363_vm0, %v714_v50, %v712_v49 }
  0x5f   :  { %673 = vrot.lane.b32.xlu1 %v672_v42, %s911_s12 }
  0x61   :  { %728 = vrot.lane.b32.xlu0 %v727_v47, %s911_s12 }
  0x63   :  { %695 = vrot.lane.b32.xlu1 %v694_v48, %s911_s12 }
  0x67   :  { %717 = vrot.lane.b32.xlu1 %v716_v51, %s911_s12 }
  0x87   :  { %v446_v52 = vpop.permute.xlu0 %445  }
  0x88   :  { %448 = vst.msk [vmem:[%s1346_s1] sm:$0xff] %vm447_vm2, %v446_v52  }
  0x8c   :  { %v456_v53 = vpop.permute.xlu0 %455  }
  0x8d   :  { %882 = vst.msk [vmem:[%s1346_s1 + $0x20] sm:$0xff] %vm447_vm2, %v456_v53  }
  0x90   :  { %v467_v54 = vpop.permute.xlu1 %466  }
  0x91   :  { %883 = vst.msk [vmem:[%s1346_s1 + $0x40] sm:$0xff] %vm447_vm2, %v467_v54  }
  0x97   :  { %v489_v55 = vpop.permute.xlu0 %488  }
  0x98   :  { %885 = vst.msk [vmem:[%s1346_s1 + $0x28] sm:$0xff] %vm447_vm2, %v489_v55  }
  0xa0   :  { %v478_v56 = vpop.permute.xlu1 %477  }
  0xa1   :  { %884 = vst.msk [vmem:[%s1346_s1 + $0x8] sm:$0xff] %vm447_vm2, %v478_v56  }
  0xa6   :  { %v511_v57 = vpop.permute.xlu0 %510  }
  0xa7   :  { %887 = vst.msk [vmem:[%s1346_s1 + $0x30] sm:$0xff] %vm447_vm2, %v511_v57  }
  0xab   :  { %v500_v58 = vpop.permute.xlu1 %499  }
  0xac   :  { %886 = vst.msk [vmem:[%s1346_s1 + $0x10] sm:$0xff] %vm447_vm2, %v500_v58  }
  0xaf   :  { %v533_v59 = vpop.permute.xlu0 %532  }
  0xb0   :  { %889 = vst.msk [vmem:[%s1346_s1 + $0x38] sm:$0xff] %vm447_vm2, %v533_v59  }
  0xb3   :  { %v554_v60 = vpop.permute.xlu0 %553  }
  0xb4   :  { %890 = vst.msk [vmem:[%s1346_s1 + $0x20] sm:$0xff] %vm545_vm3, %v554_v60  }
  0xb5   :  { %v522_v61 = vpop.permute.xlu1 %521  }
  0xb6   :  { %888 = vst.msk [vmem:[%s1346_s1 + $0x18] sm:$0xff] %vm447_vm2, %v522_v61  }
  0xb7   :  { %v576_v62 = vpop.permute.xlu0 %575  }
  0xb8   :  { %892 = vst.msk [vmem:[%s1346_s1 + $0x8] sm:$0xff] %vm545_vm3, %v576_v62  }
  0xb9   :  { %v544_v63 = vpop.permute.xlu1 %543  }
  0xba   :  { %546 = vst.msk [vmem:[%s1346_s1] sm:$0xff] %vm545_vm3, %v544_v63  }
  0xbb   :  { %v598_v0 = vpop.permute.xlu0 %597  }
  0xbc   :  { %894 = vst.msk [vmem:[%s1346_s1 + $0x10] sm:$0xff] %vm545_vm3, %v598_v0  }
  0xbd   :  { %v565_v1 = vpop.permute.xlu1 %564  }
  0xbe   :  { %891 = vst.msk [vmem:[%s1346_s1 + $0x40] sm:$0xff] %vm545_vm3, %v565_v1  }
  0xbf   :  { %v620_v2 = vpop.permute.xlu0 %619  }
  0xc0   :  { %896 = vst.msk [vmem:[%s1346_s1 + $0x18] sm:$0xff] %vm545_vm3, %v620_v2  }
  0xc1   :  { %v587_v3 = vpop.permute.xlu1 %586  }
  0xc2   :  { %893 = vst.msk [vmem:[%s1346_s1 + $0x28] sm:$0xff] %vm545_vm3, %v587_v3  }
  0xc3   :  { %v642_v4 = vpop.permute.xlu0 %641  }
  0xc4   :  { %644 = vst.msk [vmem:[%s1346_s1] sm:$0xff] %vm643_vm4, %v642_v4  }
  0xc5   :  { %v609_v5 = vpop.permute.xlu1 %608  }
  0xc6   :  { %895 = vst.msk [vmem:[%s1346_s1 + $0x30] sm:$0xff] %vm545_vm3, %v609_v5  }
  0xc7   :  { %v663_v6 = vpop.permute.xlu0 %662  }
  0xc8   :  { %899 = vst.msk [vmem:[%s1346_s1 + $0x40] sm:$0xff] %vm643_vm4, %v663_v6  }
  0xc9   :  { %v631_v7 = vpop.permute.xlu1 %630  }
  0xca   :  { %897 = vst.msk [vmem:[%s1346_s1 + $0x38] sm:$0xff] %vm545_vm3, %v631_v7  }
  0xcb   :  { %v685_v8 = vpop.permute.xlu0 %684  }
  0xcc   :  { %901 = vst.msk [vmem:[%s1346_s1 + $0x28] sm:$0xff] %vm643_vm4, %v685_v8  }
  0xcd   :  { %v652_v9 = vpop.permute.xlu1 %651  }
  0xce   :  { %898 = vst.msk [vmem:[%s1346_s1 + $0x20] sm:$0xff] %vm643_vm4, %v652_v9  }
  0xcf   :  { %v707_v10 = vpop.permute.xlu0 %706  }
  0xd0   :  { %903 = vst.msk [vmem:[%s1346_s1 + $0x30] sm:$0xff] %vm643_vm4, %v707_v10  }
  0xd1   :  { %v674_v11 = vpop.permute.xlu1 %673  }
  0xd2   :  { %900 = vst.msk [vmem:[%s1346_s1 + $0x8] sm:$0xff] %vm643_vm4, %v674_v11  }
  0xd3   :  { %v729_v12 = vpop.permute.xlu0 %728  }
  0xd4   :  { %905 = vst.msk [vmem:[%s1346_s1 + $0x38] sm:$0xff] %vm643_vm4, %v729_v12  }
  0xd5   :  { %v696_v13 = vpop.permute.xlu1 %695  }
  0xd6   :  { %902 = vst.msk [vmem:[%s1346_s1 + $0x10] sm:$0xff] %vm643_vm4, %v696_v13  }
  0xd9   :  { %v718_v14 = vpop.permute.xlu1 %717  }
  0xda   :  { %904 = vst.msk [vmem:[%s1346_s1 + $0x18] sm:$0xff] %vm643_vm4, %v718_v14  }

// kernel: neural_grid_forward.1
= control target key start
LH: loop header
LB: loop body
LE: loop exit
PB: predicated region body
PF: predicated region fallthrough
CT: control target
= control target key end

     0   :  { %s823_s12 = smov 0   ;;  %s825_s13 = smov 0   ;;  %s1074_s0 = inlined_call_operand.vmem [shape: f32[1,24,128], index: 0, kind: input, shape index: {}, may-alias: {0,3}]   ;;  %s1075_s1 = inlined_call_operand.vmem [shape: f32[3,24,128], index: 1, kind: input, shape index: {}]   ;;  %s1076_s2 = inlined_call_operand.vmem [shape: f32[3,24,128], index: 2, kind: input, shape index: {}]   ;;  %s1077_s3 = inlined_call_operand.vmem [shape: f32[1,24,128], index: 3, kind: output, shape index: {}, may-alias: {0,3}]  }
   0x1   :  { %s827_s14 = smov 0  }
   0x2 LB: > { %s22_s15 = sadd.s32 1, %s789_s13  ;;  %p695_p0 = scmp.ge.s32.totalorder %s793_s14, 1  ;;  %s793_s14 = sphi %s827_s14, %s13_s14   ;;  %s789_s13 = sphi %s825_s13, %s1083_s13   ;;  %s785_s12 = sphi %s823_s12, %s1082_s12  }
   0x3   : > { %p23_p1 = scmp.ge.s32.totalorder %s22_s15, 3  ;;  %p169_p2 = scmp.lt.s32.totalorder %s793_s14, 4 }
   0x5   : > { %s1085_s15 = smov (%p23_p1, %s22_s15), 0  ;;  %p170_p3 = pnand %p695_p0, %p169_p2 }
   0x6   : > { %p208_p4 = scmp.lt.s32.totalorder (!%p170_p3), %s785_s12, 2  ;;  %p698_p5 = scmp.ne.s32.totalorder (!%p170_p3), %s785_s12, 0 }
   0x7   : > { %173 = sbr.rel (%p170_p3) target bundleno = 272 (0x110), region = 32 }
   0xc   : > { %s209_s16 = scalar_select %p208_p4, %s785_s12, 2 }
   0xd   : > { %226 = sbr.rel (%p698_p5) target bundleno = 21 (0x15), region = 36 }
   0xe   : > { %s714_s17 = smul.u32 24, %s209_s16 }
  0x10   : > { %s212_s20 = scalar_lea.vmem %s1075_s1, %s714_s17  ;;  %s847_s23 = scalar_lea.vmem %s1076_s2, %s714_s17 }
  0x12   : > { %v227_v0 = vld [vmem:[%s1074_s0] sm:$0xff]  ;;  %v228_v1 = vld [vmem:[%s1074_s0 + $0x8] sm:$0xff]  ;;  %v229_v2 = vld [vmem:[%s1074_s0 + $0x10] sm:$0xff] }
  0x13   : > { %230 = vst [vmem:[%s1077_s3] sm:$0xff] %v227_v0  ;;  %231 = vst [vmem:[%s1077_s3 + $0x8] sm:$0xff] %v228_v1 }
  0x14   : > { %232 = vst [vmem:[%s1077_s3 + $0x10] sm:$0xff] %v229_v2 }
  0x15 PF: > { %v245_v6 = vlaneseq  ;;  %v236_v7 = vld [vmem:[%s212_s20] sm:$0xff]  ;;  %v237_v8 = vld [vmem:[%s212_s20 + $0x8] sm:$0xff]  ;;  %v238_v9 = vld [vmem:[%s212_s20 + $0x10] sm:$0xff]  ;;  %s795_s18 = smov 1   ;;  %s796_s19 = smov 127  }
  0x16   : > { %v282_v35 = vld [vmem:[%s847_s23] sm:$0xff]  ;;  %v284_v45 = vld [vmem:[%s847_s23 + $0x10] sm:$0xff]  ;;  %v283_v46 = vld [vmem:[%s847_s23 + $0x8] sm:$0xff] }
  0x17   : > { %v246_v13 = vshrl.u32 %v245_v6, 7 }
  0x19   : > { %vm247_vm0 = vcmp.lt.s32.totalorder %v246_v13, 1  ;;  %vm257_vm1 = vcmp.lt.s32.totalorder %v246_v13, 7 }
  0x1a   : > { %v233_v3 = vld [vmem:[%s1077_s3] sm:$0xff]  ;;  %v234_v4 = vld [vmem:[%s1077_s3 + $0x8] sm:$0xff] }
  0x1b   : > { %v235_v5 = vld [vmem:[%s1077_s3 + $0x10] sm:$0xff]  ;;  %v239_v10 = vmul.f32 %v236_v7, %v233_v3  ;;  %v240_v11 = vmul.f32 %v237_v8, %v234_v4  ;;  %v797_v7 = vmov 683565275  }
  0x1c   : > { %v241_v12 = vmul.f32 %v238_v9, %v235_v5  ;;  %v798_v9 = vmov 2475754826  }
  0x1d   : > { %v243_v14 = vrot.slane %v240_v11, 7  ;;  %v254_v16 = vrot.slane %v239_v10, 1  ;;  %v242_v18 = vrot.slane %v239_v10, 7  ;;  %v255_v19 = vrot.slane %v240_v11, 1 }
  0x1e   : > { %v244_v15 = vrot.slane %v241_v12, 7  ;;  %v256_v17 = vrot.slane %v241_v12, 1 }
  0x1f   : > { %v259_v24 = vsel %vm257_vm1, %v254_v16, %v255_v19  ;;  %v249_v26 = vsel %vm247_vm0, %v242_v18, %v243_v14 }
  0x20   : > { %v248_v20 = vsel %vm247_vm0, %v243_v14, %v244_v15  ;;  %v260_v22 = vsel %vm257_vm1, %v256_v17, %v254_v16  ;;  %v250_v23 = vsel %vm247_vm0, %v244_v15, %v242_v18  ;;  %v252_v28 = vadd.f32 %v249_v26, %v240_v11 }
  0x21   : > { %v253_v21 = vadd.f32 %v248_v20, %v241_v12  ;;  %v251_v25 = vadd.f32 %v250_v23, %v239_v10  ;;  %v258_v29 = vsel %vm257_vm1, %v255_v19, %v256_v17  ;;  %v799_v12 = vmov 2131351028  }
  0x22   : > { %v262_v31 = vadd.f32 %v258_v29, %v252_v28  ;;  %v800_v14 = vmov 2102212464   ;;  %v801_v16 = vmov 920167782   ;;  %v802_v23 = vmov 1326507024  }
  0x23   : > { %v263_v27 = vadd.f32 %v260_v22, %v253_v21  ;;  %v261_v30 = vadd.f32 %v259_v24, %v251_v25 }
  0x25   : > { %268 = vrot.lane.b32.xlu1 %v263_v27, %s795_s18  ;;  %264 = vrot.lane.b32.xlu0 %v261_v30, %s795_s18 }
  0x29   : > { %273 = vrot.lane.b32.xlu1 %v261_v30, %s796_s19  ;;  %266 = vrot.lane.b32.xlu0 %v262_v31, %s795_s18 }
  0x2d   : > { %277 = vrot.lane.b32.xlu1 %v263_v27, %s796_s19  ;;  %275 = vrot.lane.b32.xlu0 %v262_v31, %s796_s19 }
  0x97   : > { %v269_v32 = vpop.permute.xlu1 %268  ;;  %v265_v33 = vpop.permute.xlu0 %264 }
  0x98   : > { %v270_v34 = vadd.f32 %v265_v33, %v261_v30  ;;  %v272_v40 = vadd.f32 %v269_v32, %v263_v27 }
  0x9b   : > { %v274_v36 = vpop.permute.xlu1 %273  ;;  %v267_v38 = vpop.permute.xlu0 %266 }
  0x9c   : > { %v279_v37 = vadd.f32 %v274_v36, %v270_v34  ;;  %v271_v41 = vadd.f32 %v267_v38, %v262_v31 }
  0x9e   : > { %v877_v39 = vadd.f32 %v282_v35, %v279_v37 }
  0x9f   : > { %v278_v42 = vpop.permute.xlu1 %277  ;;  %v276_v47 = vpop.permute.xlu0 %275 }
  0xa0   : > { %v288_v43 = vand.u32 2147483647, %v877_v39  ;;  %v291_v44 = vand.u32 2139095040, %v877_v39  ;;  %v281_v48 = vadd.f32 %v278_v42, %v272_v40  ;;  %v280_v49 = vadd.f32 %v276_v47, %v271_v41 }
  0xa2   : > { %v292_v50 = vshrl.u32 %v291_v44, 23  ;;  %v295_v51 = vand.u32 8388607, %v288_v43  ;;  %v885_v52 = vadd.f32 %v284_v45, %v281_v48  ;;  %v887_v53 = vadd.f32 %v283_v46, %v280_v49 }
  0xa4   : > { %v699_v54 = vadd.s32 4294967169, %v292_v50  ;;  %v496_v55 = vand.u32 2147483647, %v885_v52  ;;  %v499_v56 = vand.u32 2139095040, %v885_v52  ;;  %v296_v58 = vor.u32 8388608, %v295_v51 }
  0xa5   : > { %v395_v61 = vand.u32 2139095040, %v887_v53 }
  0xa6   : > { %v298_v57 = vadd.s32 1, %v699_v54  ;;  %v500_v59 = vshrl.u32 %v499_v56, 23  ;;  %v503_v60 = vand.u32 8388607, %v496_v55  ;;  %v894_v3 = vshll.u32 %v296_v58, 8 }
  0xa7   : > { %v396_v0 = vshrl.u32 %v395_v61, 23 }
  0xa8   : > { %vm299_vm2 = vcmp.gt.s32.totalorder %v298_v57, 0  ;;  %v707_v63 = vadd.s32 4294967169, %v500_v59  ;;  %v504_v4 = vor.u32 8388608, %v503_v60 }
  0xa9   : > { %v300_v62 = vsel %vm299_vm2, %v298_v57, 0  ;;  %v703_v11 = vadd.s32 4294967169, %v396_v0 }
  0xaa   : > { %v301_v1 = vshrl.u32 %v300_v62, 5  ;;  %v302_v2 = vand.u32 31, %v300_v62  ;;  %v506_v5 = vadd.s32 1, %v707_v63  ;;  %v916_v47 = vshll.u32 %v504_v4, 8 }
  0xab   : > { %v402_v57 = vadd.s32 1, %v703_v11 }
  0xac   : > { %v303_v6 = vsub.s32 32, %v302_v2  ;;  %v305_v8 = vshll.u32 %v797_v7, %v302_v2  ;;  %v308_v10 = vshll.u32 %v798_v9, %v302_v2  ;;  %v311_v13 = vshll.u32 %v799_v12, %v302_v2 }
  0xad   : > { %v314_v15 = vshll.u32 %v800_v14, %v302_v2  ;;  %v317_v17 = vshll.u32 %v801_v16, %v302_v2  ;;  %vm320_vm3 = vcmp.lt.s32.totalorder %v301_v1, 1  ;;  %vm321_vm4 = vcmp.lt.s32.totalorder %v301_v1, 2 }
  0xae   : > { %v306_v18 = vshrl.u32 %v798_v9, %v303_v6  ;;  %v309_v19 = vshrl.u32 %v799_v12, %v303_v6  ;;  %v312_v20 = vshrl.u32 %v800_v14, %v303_v6  ;;  %v304_v21 = vshrl.u32 %v797_v7, %v303_v6 }
  0xaf   : > { %v315_v22 = vshrl.u32 %v801_v16, %v303_v6  ;;  %v318_v24 = vshrl.u32 %v802_v23, %v303_v6  ;;  %vm322_vm5 = vcmp.lt.s32.totalorder %v301_v1, 3  ;;  %vm507_vm6 = vcmp.gt.s32.totalorder %v506_v5, 0 }
  0xb0   : > { %v307_v25 = vor.u32 %v306_v18, %v305_v8  ;;  %v310_v26 = vor.u32 %v309_v19, %v308_v10  ;;  %v313_v27 = vor.u32 %v312_v20, %v311_v13  ;;  %vm323_vm7 = vcmp.lt.s32.totalorder %v301_v1, 4 }
  0xb1   : > { %v316_v28 = vor.u32 %v315_v22, %v314_v15  ;;  %v319_v29 = vor.u32 %v318_v24, %v317_v17  ;;  %v508_v30 = vsel %vm507_vm6, %v506_v5, 0  ;;  %vm403_vm12 = vcmp.gt.s32.totalorder %v402_v57, 0 }
  0xb2   : > { %v324_v31 = vsel %vm320_vm3, %v304_v21, %v307_v25  ;;  %v325_v32 = vsel %vm323_vm7, %v313_v27, 2102212464  ;;  %v328_v33 = vsel %vm320_vm3, %v307_v25, %v310_v26  ;;  %v332_v34 = vsel %vm320_vm3, %v310_v26, %v313_v27 }
  0xb3   : > { %v326_v35 = vsel %vm322_vm5, %v310_v26, %v325_v32  ;;  %v329_v36 = vsel %vm323_vm7, %v316_v28, 920167782  ;;  %v333_v37 = vsel %vm323_vm7, %v319_v29, 1326507024  ;;  %v509_v38 = vshrl.u32 %v508_v30, 5 }
  0xb4   : > { %v327_v40 = vsel %vm321_vm4, %v324_v31, %v326_v35  ;;  %v330_v41 = vsel %vm322_vm5, %v313_v27, %v329_v36  ;;  %v334_v42 = vsel %vm322_vm5, %v316_v28, %v333_v37  ;;  %v510_v44 = vand.u32 31, %v508_v30 }
  0xb5   : > { %v331_v45 = vsel %vm321_vm4, %v328_v33, %v330_v41  ;;  %v335_v46 = vsel %vm321_vm4, %v332_v34, %v334_v42  ;;  %v343_v54 = vmul.u32 %v894_v3, %v327_v40  ;;  %vm528_vm8 = vcmp.lt.s32.totalorder %v509_v38, 1 }
  0xb6   : > { %v919_v48 = vmul.u32.u64.low %v894_v3, %v335_v46  ;;  %v920_v49 = vmul.u32.u64.high %v894_v3, %v335_v46, %v919_v48  ;;  %v923_v50 = vmul.u32.u64.low %v894_v3, %v331_v45  ;;  %v924_v51 = vmul.u32.u64.high %v894_v3, %v331_v45, %v923_v50 }
  0xb7   : > { %v511_v56 = vsub.s32 32, %v510_v44  ;;  %v513_v58 = vshll.u32 %v797_v7, %v510_v44  ;;  %v516_v59 = vshll.u32 %v798_v9, %v510_v44  ;;  %v519_v60 = vshll.u32 %v799_v12, %v510_v44 }
  0xb8   : > { %v522_v61 = vshll.u32 %v800_v14, %v510_v44  ;;  %v525_v1 = vshll.u32 %v801_v16, %v510_v44  ;;  %vm345_vm9 = vc.u32 %v920_v49, %v923_v50  ;;  %v346_v2 = vadd.s32 1, %v924_v51 }
  0xb9   : > { %v514_v62 = vshrl.u32 %v798_v9, %v511_v56  ;;  %v517_v63 = vshrl.u32 %v799_v12, %v511_v56  ;;  %v520_v0 = vshrl.u32 %v800_v14, %v511_v56  ;;  %v523_v3 = vshrl.u32 %v801_v16, %v511_v56 }
  0xba   : > { %vm529_vm10 = vcmp.lt.s32.totalorder %v509_v38, 2  ;;  %v526_v8 = vshrl.u32 %v802_v23, %v511_v56  ;;  %v347_v10 = vsel %vm345_vm9, %v346_v2, %v924_v51  ;;  %v512_v11 = vshrl.u32 %v797_v7, %v511_v56 }
  0xbb   : > { %v515_v4 = vor.u32 %v514_v62, %v513_v58  ;;  %v518_v5 = vor.u32 %v517_v63, %v516_v59  ;;  %v521_v6 = vor.u32 %v520_v0, %v519_v60  ;;  %v524_v13 = vor.u32 %v523_v3, %v522_v61 }
  0xbc   : > { %vm531_vm11 = vcmp.lt.s32.totalorder %v509_v38, 4  ;;  %v348_v15 = vadd.s32 %v347_v10, %v343_v54  ;;  %v527_v17 = vor.u32 %v526_v8, %v525_v1  ;;  %vm530_vm13 = vcmp.lt.s32.totalorder %v509_v38, 3 }
  0xbd   : > { %v533_v18 = vsel %vm531_vm11, %v521_v6, 2102212464  ;;  %v536_v19 = vsel %vm528_vm8, %v515_v4, %v518_v5  ;;  %v537_v20 = vsel %vm531_vm11, %v524_v13, 920167782  ;;  %v540_v21 = vsel %vm528_vm8, %v518_v5, %v521_v6 }
  0xbe   : > { %v349_v22 = vadd.s32 536870912, %v348_v15  ;;  %v532_v24 = vsel %vm528_vm8, %v512_v11, %v515_v4  ;;  %v538_v25 = vsel %vm530_vm13, %v521_v6, %v537_v20  ;;  %v541_v26 = vsel %vm531_vm11, %v527_v17, 1326507024 }
  0xbf   : > { %v534_v27 = vsel %vm530_vm13, %v518_v5, %v533_v18  ;;  %v539_v28 = vsel %vm529_vm10, %v536_v19, %v538_v25  ;;  %v542_v29 = vsel %vm530_vm13, %v524_v13, %v541_v26  ;;  %v404_v30 = vsel %vm403_vm12, %v402_v57, 0 }
  0xc0   : > { %v947_v31 = vshrl.u32 %v349_v22, 30  ;;  %v543_v32 = vsel %vm529_vm10, %v540_v21, %v542_v29  ;;  %v951_v33 = vmul.u32.u64.low %v916_v47, %v539_v28  ;;  %v952_v34 = vmul.u32.u64.high %v916_v47, %v539_v28, %v951_v33 }
  0xc1   : > { %v956_v35 = vmul.u32.u64.low %v916_v47, %v543_v32  ;;  %v957_v36 = vmul.u32.u64.high %v916_v47, %v543_v32, %v956_v35  ;;  %v406_v37 = vand.u32 31, %v404_v30  ;;  %v535_v41 = vsel %vm529_vm10, %v532_v24, %v534_v27 }
  0xc2   : > { %v351_v40 = vshll.u32 %v947_v31, 30  ;;  %v392_v42 = vand.u32 2147483647, %v887_v53  ;;  %v554_v46 = vadd.s32 1, %v952_v34  ;;  %v551_v48 = vmul.u32 %v916_v47, %v535_v41 }
  0xc3   : > { %v407_v44 = vsub.s32 32, %v406_v37  ;;  %vm553_vm14 = vc.u32 %v957_v36, %v951_v33  ;;  %v418_v60 = vshll.u32 %v800_v14, %v406_v37  ;;  %v405_v62 = vshrl.u32 %v404_v30, 5 }
  0xc4   : > { %v352_v45 = vsub.s32 %v348_v15, %v351_v40  ;;  %v555_v54 = vsel %vm553_vm14, %v554_v46, %v952_v34  ;;  %v399_v56 = vand.u32 8388607, %v392_v42  ;;  %v409_v2 = vshll.u32 %v797_v7, %v406_v37 }
  0xc5   : > { %v556_v57 = vadd.s32 %v555_v54, %v551_v48  ;;  %v419_v38 = vshrl.u32 %v801_v16, %v407_v44  ;;  %v410_v59 = vshrl.u32 %v798_v9, %v407_v44  ;;  %v413_v47 = vshrl.u32 %v799_v12, %v407_v44 }
  0xc6   : > { %v354_v51 = vsub.s32 0, %v352_v45  ;;  %v416_v63 = vshrl.u32 %v800_v14, %v407_v44  ;;  %v400_v1 = vor.u32 8388608, %v399_v56  ;;  %v412_v5 = vshll.u32 %v798_v9, %v406_v37 }
  0xc7   : > { %v557_v61 = vadd.s32 536870912, %v556_v57  ;;  %v420_v3 = vor.u32 %v419_v38, %v418_v60  ;;  %v415_v6 = vshll.u32 %v799_v12, %v406_v37  ;;  %v422_v8 = vshrl.u32 %v802_v23, %v407_v44 }
  0xc8   : > { %v700_v58 = vmin.u32 %v354_v51, %v352_v45  ;;  %v411_v11 = vor.u32 %v410_v59, %v409_v2  ;;  %v421_v13 = vshll.u32 %v801_v16, %v406_v37  ;;  %v414_v14 = vor.u32 %v413_v47, %v412_v5 }
  0xc9   : > { %v975_v4 = vshrl.u32 %v557_v61, 30  ;;  %v417_v17 = vor.u32 %v416_v63, %v415_v6  ;;  %vm427_vm15 = vcmp.lt.s32.totalorder %v405_v62, 4  ;;  %v344_v18 = vadd.s32 %v923_v50, %v920_v49 }
  0xca   : > { %v356_v0 = vclz %v700_v58  ;;  %v423_v19 = vor.u32 %v422_v8, %v421_v13  ;;  %v433_v9 = vsel %vm427_vm15, %v420_v3, 920167782  ;;  %v408_v23 = vshrl.u32 %v797_v7, %v407_v44 }
  0xcb   : > { %v559_v15 = vshll.u32 %v975_v4, 30  ;;  %v440_v21 = vshll.u32 %v400_v1, 8  ;;  %vm424_vm1 = vcmp.lt.s32.totalorder %v405_v62, 1  ;;  %vm426_vm2 = vcmp.lt.s32.totalorder %v405_v62, 3 }
  0xcc   : > { %v701_v10 = vadd.s32 4294967294, %v356_v0  ;;  %v432_v25 = vsel %vm424_vm1, %v411_v11, %v414_v14  ;;  %v434_v26 = vsel %vm426_vm2, %v417_v17, %v433_v9  ;;  %v436_v49 = vsel %vm424_vm1, %v414_v14, %v417_v17 }
  0xcd   : > { %v560_v12 = vsub.s32 %v556_v57, %v559_v15  ;;  %v437_v29 = vsel %vm427_vm15, %v423_v19, 1326507024  ;;  %vm425_vm3 = vcmp.lt.s32.totalorder %v405_v62, 2  ;;  %v429_v7 = vsel %vm427_vm15, %v417_v17, 2102212464 }
  0xce   : > { %vm702_vm0 = vcmp.lt.s32.totalorder %v701_v10, 0  ;;  %v438_v32 = vsel %vm426_vm2, %v420_v3, %v437_v29  ;;  %v435_v37 = vsel %vm425_vm3, %v432_v25, %v434_v26  ;;  %v428_v44 = vsel %vm424_vm1, %v408_v23, %v411_v11 }
  0xcf   : > { %v359_v20 = vsel %vm702_vm0, 0, %v701_v10  ;;  %v562_v16 = vsub.s32 0, %v560_v12  ;;  %v439_v40 = vsel %vm425_vm3, %v436_v49, %v438_v32  ;;  %v430_v46 = vsel %vm426_vm2, %v414_v14, %v429_v7 }
  0xd0   : > { %v360_v22 = vsub.s32 32, %v359_v20  ;;  %v364_v24 = vsub.s32 4294967266, %v359_v20  ;;  %v361_v50 = vshll.u32 %v352_v45, %v359_v20  ;;  %v431_v59 = vsel %vm425_vm3, %v428_v44, %v430_v46 }
  0xd1   : > { %v708_v30 = vmin.u32 %v562_v16, %v560_v12  ;;  %v996_v48 = vmul.u32.u64.low %v440_v21, %v439_v40  ;;  %v997_v51 = vmul.u32.u64.high %v440_v21, %v439_v40, %v996_v48  ;;  %v552_v47 = vadd.s32 %v951_v33, %v957_v36 }
  0xd2   : > { %v362_v27 = vshrl.u32 %v344_v18, %v360_v22  ;;  %v365_v28 = vadd.s32 127, %v364_v24  ;;  %v999_v56 = vmul.u32.u64.low %v440_v21, %v435_v37  ;;  %v1000_v57 = vmul.u32.u64.high %v440_v21, %v435_v37, %v999_v56 }
  0xd3   : > { %v564_v41 = vclz %v708_v30  ;;  %vm290_vm6 = vcmp.lt.s32.totalorder %v877_v39, 0  ;;  %v374_v3 = vsub.s32 4, %v947_v31  ;;  %v447_v5 = vmul.u32 %v440_v21, %v431_v59 }
  0xd4   : > { %v363_v34 = vor.u32 %v362_v27, %v361_v50  ;;  %v366_v35 = vshll.u32 %v365_v28, 23  ;;  %vm449_vm5 = vc.u32 %v997_v51, %v999_v56  ;;  %v450_v1 = vadd.s32 1, %v1000_v57 }
  0xd5   : > { %v709_v54 = vadd.s32 4294967294, %v564_v41  ;;  %vm1014_vm7 = vcmp.le.f32.partialorder %v288_v43, 0.7853982  ;;  %v375_v18 = vsel %vm290_vm6, %v374_v3, %v947_v31  ;;  %v582_v25 = vsub.s32 4, %v975_v4 }
  0xd6   : > { %v367_v45 = vor.u32 4788187, %v366_v35  ;;  %v370_v58 = vcvt.s32.f32 %v363_v34  ;;  %v451_v10 = vsel %vm449_vm5, %v450_v1, %v1000_v57  ;;  %vm498_vm8 = vcmp.lt.s32.totalorder %v885_v52, 0 }
  0xd7   : > { %vm710_vm4 = vcmp.lt.s32.totalorder %v709_v54, 0  ;;  %v452_v36 = vadd.s32 %v451_v10, %v447_v5  ;;  %vm1035_vm9 = vcmp.le.f32.partialorder %v496_v55, 0.7853982  ;;  %v583_v29 = vsel %vm498_vm8, %v582_v25, %v975_v4 }
  0xd8   : > { %v368_v38 = vand.u32 2147483647, %v367_v45  ;;  %v567_v61 = vsel %vm710_vm4, 0, %v709_v54  ;;  %v585_v55 = vsel %vm1035_vm9, 0, %v583_v29  ;;  %vm380_vm11 = vweird.f32 %v877_v39 }
  0xd9   : > { %v568_v63 = vsub.s32 32, %v567_v61  ;;  %v572_v0 = vsub.s32 4294967266, %v567_v61  ;;  %v569_v62 = vshll.u32 %v560_v12, %v567_v61  ;;  %v453_v17 = vadd.s32 536870912, %v452_v36 }
  0xda   : > { %v371_v60 = vmul.f32 %v370_v58, %v368_v38  ;;  %v377_v12 = vsel %vm1014_vm7, 0, %v375_v18  ;;  %v589_v4 = vadd.s32 3, %v585_v55  ;;  %v448_v46 = vadd.s32 %v999_v56, %v997_v51 }
  0xdb   : > { %v570_v6 = vshrl.u32 %v552_v47, %v568_v63  ;;  %v573_v8 = vadd.s32 127, %v572_v0  ;;  %v1026_v19 = vshrl.u32 %v453_v17, 30  ;;  %v381_v24 = vadd.s32 3, %v377_v12 }
  0xdc   : > { %v372_v2 = vxor.u32 2147483648, %v371_v60  ;;  %v590_v59 = vand.u32 3, %v589_v4  ;;  %vm588_vm2 = vweird.f32 %v885_v52  ;;  %vm394_vm3 = vcmp.lt.s32.totalorder %v887_v53, 0 }
  0xdd   : > { %v571_v15 = vor.u32 %v570_v6, %v569_v62  ;;  %v574_v14 = vshll.u32 %v573_v8, 23  ;;  %v455_v23 = vshll.u32 %v1026_v19, 30  ;;  %v382_v28 = vand.u32 3, %v381_v24 }
  0xde   : > { %v373_v33 = vsel %vm290_vm6, %v372_v2, %v371_v60  ;;  %vm595_vm15 = vcmp.eq.s32.totalorder %v590_v59, 2  ;;  %vm592_vm0 = vcmp.eq.s32.totalorder %v590_v59, 0  ;;  %vm591_vm1 = vcmp.lt.s32.totalorder %v590_v59, 2 }
  0xdf   : > { %v376_v13 = vsel %vm1014_vm7, %v877_v39, %v373_v33  ;;  %v575_v43 = vor.u32 4788187, %v574_v14  ;;  %v578_v20 = vcvt.s32.f32 %v571_v15  ;;  %v456_v22 = vsub.s32 %v452_v36, %v455_v23 }
  0xe0   : > { %759 = vcosq.f32 %v376_v13  ;;  %vm387_vm10 = vcmp.eq.s32.totalorder %v382_v28, 2  ;;  %vm384_vm12 = vcmp.eq.s32.totalorder %v382_v28, 0  ;;  %vm383_vm14 = vcmp.lt.s32.totalorder %v382_v28, 2 }
  0xe1   : > { %761 = vsinq.f32 %v376_v13  ;;  %v576_v9 = vand.u32 2147483647, %v575_v43  ;;  %v458_v31 = vsub.s32 0, %v456_v22  ;;  %v478_v11 = vsub.s32 4, %v1026_v19 }
  0xe2   : > { %vm393_vm4 = vcmp.le.f32.partialorder %v392_v42, 0.7853982 }
  0xe3   : > { %v579_v21 = vmul.f32 %v578_v20, %v576_v9  ;;  %v704_v27 = vmin.u32 %v458_v31, %v456_v22 }
  0xe5   : > { %v580_v16 = vxor.u32 2147483648, %v579_v21  ;;  %v460_v30 = vclz %v704_v27 }
  0xe7   : > { %v581_v49 = vsel %vm498_vm8, %v580_v16, %v579_v21  ;;  %v705_v35 = vadd.s32 4294967294, %v460_v30  ;;  %vm484_vm8 = vweird.f32 %v887_v53 }
  0xe8   : > { %v584_v50 = vsel %vm1035_vm9, %v885_v52, %v581_v49  ;;  %v479_v52 = vsel %vm394_vm3, %v478_v11, %v1026_v19 }
  0xe9   : > { %763 = vcosq.f32 %v584_v50  ;;  %vm706_vm13 = vcmp.lt.s32.totalorder %v705_v35, 0  ;;  %v481_v13 = vsel %vm393_vm4, 0, %v479_v52 }
  0xea   : > { %765 = vsinq.f32 %v584_v50  ;;  %v463_v44 = vsel %vm706_vm13, 0, %v705_v35  ;;  %v485_v15 = vadd.s32 3, %v481_v13 }
  0xeb   : > { %v464_v48 = vsub.s32 32, %v463_v44  ;;  %v468_v54 = vsub.s32 4294967266, %v463_v44  ;;  %v465_v38 = vshll.u32 %v456_v22, %v463_v44 }
  0xec   : > { %v486_v14 = vand.u32 3, %v485_v15 }
  0xed   : > { %v760_v7 = vpop.eup %759  ;;  %v466_v39 = vshrl.u32 %v448_v46, %v464_v48  ;;  %v469_v58 = vadd.s32 127, %v468_v54 }
  0xee   : > { %v762_v32 = vpop.eup %761  ;;  %v388_v34 = vxor.u32 2147483648, %v760_v7  ;;  %vm491_vm5 = vcmp.eq.s32.totalorder %v486_v14, 2  ;;  %vm488_vm6 = vcmp.eq.s32.totalorder %v486_v14, 0  ;;  %vm487_vm7 = vcmp.lt.s32.totalorder %v486_v14, 2 }
  0xef   : > { %v385_v37 = vxor.u32 2147483648, %v762_v32  ;;  %v467_v60 = vor.u32 %v466_v39, %v465_v38  ;;  %v470_v61 = vshll.u32 %v469_v58, 23 }
  0xf0   : > { %v389_v40 = vsel %vm387_vm10, %v388_v34, %v762_v32 }
  0xf1   : > { %v386_v41 = vsel %vm384_vm12, %v760_v7, %v385_v37  ;;  %v471_v63 = vor.u32 4788187, %v470_v61  ;;  %v474_v56 = vcvt.s32.f32 %v467_v60 }
  0xf2   : > { %v390_v45 = vsel %vm383_vm14, %v386_v41, %v389_v40 }
  0xf3   : > { %v391_v57 = vsel %vm380_vm11, nan, %v390_v45  ;;  %v472_v51 = vand.u32 2147483647, %v471_v63 }
  0xf4   : > { %600 = vst [vmem:[%s1077_s3] sm:$0xff] %v391_v57 }
  0xf5   : > { %v475_v62 = vmul.f32 %v474_v56, %v472_v51 }
  0xf6   : > { %v764_v47 = vpop.eup %763 }
  0xf7   : > { %v766_v0 = vpop.eup %765  ;;  %v596_v1 = vxor.u32 2147483648, %v764_v47  ;;  %v476_v10 = vxor.u32 2147483648, %v475_v62 }
  0xf8   : > { %v593_v2 = vxor.u32 2147483648, %v766_v0 }
  0xf9   : > { %v597_v3 = vsel %vm595_vm15, %v596_v1, %v766_v0  ;;  %v477_v33 = vsel %vm394_vm3, %v476_v10, %v475_v62 }
  0xfa   : > { %v594_v5 = vsel %vm592_vm0, %v764_v47, %v593_v2  ;;  %v480_v36 = vsel %vm393_vm4, %v887_v53, %v477_v33 }
  0xfb   : > { %v598_v6 = vsel %vm591_vm1, %v594_v5, %v597_v3  ;;  %767 = vcosq.f32 %v480_v36 }
  0xfc   : > { %v599_v8 = vsel %vm588_vm2, nan, %v598_v6  ;;  %769 = vsinq.f32 %v480_v36 }
  0xfd   : > { %602 = vst [vmem:[%s1077_s3 + $0x10] sm:$0xff] %v599_v8 }
 0x108   : > { %v768_v17 = vpop.eup %767 }
 0x109   : > { %v770_v18 = vpop.eup %769  ;;  %v492_v43 = vxor.u32 2147483648, %v768_v17 }
 0x10a   : > { %v489_v9 = vxor.u32 2147483648, %v770_v18 }
 0x10b   : > { %v493_v20 = vsel %vm491_vm5, %v492_v43, %v770_v18 }
 0x10c   : > { %v490_v12 = vsel %vm488_vm6, %v768_v17, %v489_v9 }
 0x10d   : > { %v494_v42 = vsel %vm487_vm7, %v490_v12, %v493_v20 }
 0x10e   : > { %v495_v23 = vsel %vm484_vm8, nan, %v494_v42 }
 0x10f   : > { %601 = vst [vmem:[%s1077_s3 + $0x8] sm:$0xff] %v495_v23 }
 0x110 PF: > { %s13_s14 = sadd.s32 1, %s793_s14   ;;  %s1082_s12 = smov %s789_s13 }
 0x111   : > { %p10_p6 = scmp.ge.s32.totalorder %s13_s14, 5   ;;  %s1083_s13 = smov %s1085_s15 }
 0x113   :  { %12 = sbr.rel (!%p10_p6) target bundleno = 2 (0x2), region = 72 }

</bundles_post_ra>
